<compile_context>
chip_gen: v6e
topology: v6e:2x2x1
jax: 0.10.0
libtpu: 0.0.40
codegen_flags: <defaults>
</compile_context>

<pallas_src>
import jax
import jax.numpy as jnp
from jax import lax
from jax.experimental import pallas as pl
from jax.experimental.pallas import tpu as pltpu


def _round_up(x: int, m: int) -> int:
    return ((x + m - 1) // m) * m


# --------------------------------------------------------------------------
# Kernel 1: Node-Adaptive Graph Convolution (GCN.forward, default path)
# --------------------------------------------------------------------------
def gcn_kernel(e_ref, et_ref, x_ref, wp_ref, bp_ref, out_ref):
    # e_ref : (N, D)      et_ref : (D, N)      x_ref : (N, Ci)   (batch squeezed)
    # wp_ref: (D*K, Ci, Cp)   bp_ref: (D, Cp)   out_ref: (N, Cp)
    f32 = jnp.float32
    E = e_ref[...].astype(f32)
    X = x_ref[...].astype(f32)
    N, D = E.shape
    K = wp_ref.shape[0] // D

    # supports = softmax(relu(E @ E^T), axis=1)
    a = jnp.dot(E, et_ref[...].astype(f32), preferred_element_type=f32)
    a = jnp.maximum(a, 0.0)
    a = a - jnp.max(a, axis=1, keepdims=True)
    ea = jnp.exp(a)
    p = ea / jnp.sum(ea, axis=1, keepdims=True)

    # Per-hop aggregated features xg[k] = S_k @ X, with
    #   S_0 = I (so xg[0] = X), S_1 = P, S_k = 2 P S_{k-1} - S_{k-2}.
    xg = [X, jnp.dot(p, X, preferred_element_type=f32)]
    if K > 2:
        r = lax.broadcasted_iota(jnp.int32, (N, N), 0)
        c = lax.broadcasted_iota(jnp.int32, (N, N), 1)
        s_km2 = (r == c).astype(f32)
        s_km1 = p
        for _ in range(2, K):
            s_k = 2.0 * jnp.dot(p, s_km1, preferred_element_type=f32) - s_km2
            xg.append(jnp.dot(s_k, X, preferred_element_type=f32))
            s_km2, s_km1 = s_km1, s_k
    xg = xg[:K]

    # out = E @ bias_pool + sum_d E[:, d] * ( sum_k xg[k] @ Wp[d, k] )
    acc = jnp.dot(E, bp_ref[...].astype(f32), preferred_element_type=f32)
    for d in range(D):
        y = jnp.dot(xg[0], wp_ref[d * K + 0].astype(f32),
                    preferred_element_type=f32)
        for k in range(1, K):
            y = y + jnp.dot(xg[k], wp_ref[d * K + k].astype(f32),
                            preferred_element_type=f32)
        acc = acc + E[:, d:d + 1] * y

    out_ref[...] = acc.astype(out_ref.dtype)


def gcn_adaptive_conv(x, e, weights_pool, bias_pool):
    """x: [B, N, Ci]; e: [N, D]; weights_pool: [D, K, Ci, Co]; bias_pool: [D, Co]."""
    B, N, Ci = x.shape
    Ne, D = e.shape
    Dp, K, Ci2, Co = weights_pool.shape
    assert Ne == N and Dp == D and Ci2 == Ci and K >= 2
    out_dtype = x.dtype

    ci_pad = _round_up(Ci, 8)                    # aligned MXU contraction dim
    co_pad = _round_up(max(Co, 128), 128)        # lane-dense unmasked stores

    xp = jnp.pad(x, ((0, 0), (0, 0), (0, ci_pad - Ci)))
    wp = jnp.pad(weights_pool,
                 ((0, 0), (0, 0), (0, ci_pad - Ci), (0, co_pad - Co)))
    wp = wp.reshape(D * K, ci_pad, co_pad)
    bp = jnp.pad(bias_pool, ((0, 0), (0, co_pad - Co)))

    out = pl.pallas_call(
        gcn_kernel,
        out_shape=jax.ShapeDtypeStruct((B, N, co_pad), out_dtype),
        grid_spec=pltpu.PrefetchScalarGridSpec(
            num_scalar_prefetch=0,
            grid=(B,),
            in_specs=[
                pl.BlockSpec((N, D), lambda b: (0, 0)),                 # E (resident)
                pl.BlockSpec((D, N), lambda b: (0, 0)),                 # E^T (resident)
                pl.BlockSpec((None, N, ci_pad), lambda b: (b, 0, 0)),   # X[b]
                pl.BlockSpec((D * K, ci_pad, co_pad), lambda b: (0, 0, 0)),
                pl.BlockSpec((D, co_pad), lambda b: (0, 0)),
            ],
            out_specs=pl.BlockSpec((None, N, co_pad), lambda b: (b, 0, 0)),
        ),
        compiler_params=pltpu.CompilerParams(
            dimension_semantics=("parallel",)),
    )(e, e.T, xp, wp, bp)

    return out[:, :, :Co]


# --------------------------------------------------------------------------
# Kernel 2: M2_MLP classifier head (eval-mode dropout == identity)
# --------------------------------------------------------------------------
def m2_mlp_kernel(x_ref, w1_ref, b1_ref, w2_ref, b2_ref, out_ref):
    # x_ref: (tn, H)   w1_ref: (H, H)   b1_ref: (1, H)
    # w2_ref: (H, Cp)  b2_ref: (1, Cp)  out_ref: (tn, Cp)
    x = x_ref[...].astype(jnp.float32)

    # h = x + m21(tanh(x))          (dropout -> identity in eval mode)
    h = (x
         + jnp.dot(jnp.tanh(x), w1_ref[...].astype(jnp.float32),
                   preferred_element_type=jnp.float32)
         + b1_ref[...].astype(jnp.float32))

    # y = m22(tanh(h))              (padded output cols hit zero weight/bias)
    y = (jnp.dot(jnp.tanh(h), w2_ref[...].astype(jnp.float32),
                 preferred_element_type=jnp.float32)
         + b2_ref[...].astype(jnp.float32))

    out_ref[...] = y.astype(out_ref.dtype)


def m2_mlp(x, w1, b1, w2, b2, *, tile_n=None, max_tile_n=1024):
    """x: [N, H]; w1: [H, H] (in,out); b1: [H]; w2: [H, C] (in,out); b2: [C]."""
    N, H = x.shape
    C = w2.shape[1]
    out_dtype = x.dtype

    if tile_n is None:
        tile_n = min(_round_up(N, 8), max_tile_n)
    tile_n = _round_up(tile_n, 8)

    n_tiles = pl.cdiv(N, tile_n)
    n_pad = n_tiles * tile_n
    if n_pad != N:
        x = jnp.pad(x, ((0, n_pad - N), (0, 0)))

    c_pad = _round_up(max(C, 128), 128)
    w2p = jnp.pad(w2, ((0, 0), (0, c_pad - C)))
    b2p = jnp.pad(b2.reshape(1, C), ((0, 0), (0, c_pad - C)))
    b1p = b1.reshape(1, H)

    out = pl.pallas_call(
        m2_mlp_kernel,
        out_shape=jax.ShapeDtypeStruct((n_pad, c_pad), out_dtype),
        grid_spec=pltpu.PrefetchScalarGridSpec(
            num_scalar_prefetch=0,
            grid=(n_tiles,),
            in_specs=[
                pl.BlockSpec((tile_n, H), lambda i: (i, 0)),   # x row tile
                pl.BlockSpec((H, H), lambda i: (0, 0)),        # W1 (VMEM resident)
                pl.BlockSpec((1, H), lambda i: (0, 0)),        # b1
                pl.BlockSpec((H, c_pad), lambda i: (0, 0)),    # W2 (padded, resident)
                pl.BlockSpec((1, c_pad), lambda i: (0, 0)),    # b2 (padded)
            ],
            out_specs=pl.BlockSpec((tile_n, c_pad), lambda i: (i, 0)),
        ),
        compiler_params=pltpu.CompilerParams(
            dimension_semantics=("parallel",)),
    )(x, w1, b1p, w2p, b2p)

    return out[:N, :C]


# --------------------------------------------------------------------------
# Pure-JAX references
# --------------------------------------------------------------------------
def gcn_reference(x, e, weights_pool, bias_pool):
    hp = lax.Precision.HIGHEST
    K = weights_pool.shape[1]
    N = e.shape[0]
    a = jax.nn.softmax(jnp.maximum(jnp.matmul(e, e.T, precision=hp), 0.0), axis=1)
    supports = [jnp.eye(N, dtype=x.dtype), a]
    for _ in range(2, K):
        supports.append(2.0 * jnp.matmul(a, supports[-1], precision=hp)
                        - supports[-2])
    s = jnp.stack(supports[:K], axis=0)                              # (K, N, N)
    w = jnp.einsum('nd,dkio->nkio', e, weights_pool, precision=hp)   # (N, K, Ci, Co)
    bias = jnp.matmul(e, bias_pool, precision=hp)                    # (N, Co)
    xg = jnp.einsum('knm,bmc->bknc', s, x, precision=hp)             # (B, K, N, Ci)
    xg = jnp.transpose(xg, (0, 2, 1, 3))                             # (B, N, K, Ci)
    return jnp.einsum('bnki,nkio->bno', xg, w, precision=hp) + bias[None]


def m2_mlp_reference(x, w1, b1, w2, b2):
    hp = lax.Precision.HIGHEST
    h = x + jnp.matmul(jnp.tanh(x), w1, precision=hp) + b1
    return jnp.matmul(jnp.tanh(h), w2, precision=hp) + b2


# --------------------------------------------------------------------------
if __name__ == "__main__":
    # Small shapes consistent with the module: B batches, N nodes,
    # in_channels, hidden_dim, embed_dim, max_view (K), num_classes.
    B, N, CI, HIDDEN, EMBED, K, NUM_CLASSES = 2, 16, 6, 32, 8, 3, 8

    key = jax.random.PRNGKey(0)
    kx, ke, kw, kb, kw1, kb1, kw2, kb2 = jax.random.split(key, 8)

    x = jax.random.normal(kx, (B, N, CI), dtype=jnp.float32)
    e = jax.random.normal(ke, (N, EMBED), dtype=jnp.float32)

    glorot = (2.0 / (CI + HIDDEN)) ** 0.5
    wpool = glorot * jax.random.normal(kw, (EMBED, K, CI, HIDDEN), dtype=jnp.float32)
    bpool = 0.1 * jax.random.normal(kb, (EMBED, HIDDEN), dtype=jnp.float32)

    bound = 1.0 / (HIDDEN ** 0.5)
    w1 = jax.random.uniform(kw1, (HIDDEN, HIDDEN), jnp.float32, -bound, bound)
    b1 = jax.random.uniform(kb1, (HIDDEN,), jnp.float32, -bound, bound)
    w2 = jax.random.uniform(kw2, (HIDDEN, NUM_CLASSES), jnp.float32, -bound, bound)
    b2 = jax.random.uniform(kb2, (NUM_CLASSES,), jnp.float32, -bound, bound)

    # --- GCN encoder kernel ---
    g = jax.block_until_ready(gcn_adaptive_conv(x, e, wpool, bpool))
    g_ref = gcn_reference(x, e, wpool, bpool)
    assert g.shape == (B, N, HIDDEN)
    assert jnp.allclose(g, g_ref, atol=3e-2, rtol=3e-2), "GCN mismatch"

    # TODO(synk): graph-ODE block between encoder and head not implemented;
    # the demo chains the two kernels directly.
    z = g.reshape(B * N, HIDDEN)

    # --- M2_MLP head kernel (single row tile) ---
    y = jax.block_until_ready(m2_mlp(z, w1, b1, w2, b2))
    y_ref = m2_mlp_reference(z, w1, b1, w2, b2)
    assert y.shape == (B * N, NUM_CLASSES)
    assert jnp.allclose(y, y_ref, atol=3e-2, rtol=3e-2), "M2_MLP mismatch"

    # Multi-tile row path (exercises the pipelined grid).
    y2 = jax.block_until_ready(m2_mlp(z, w1, b1, w2, b2, tile_n=16))
    assert jnp.allclose(y2, y_ref, atol=3e-2, rtol=3e-2), "M2_MLP mismatch (tiled)"

    print("KERNEL_OK")
</pallas_src>

<mosaic_0001>
module attributes {stable_mosaic.version = 11 : i64} {
  func.func @gcn_kernel(%arg0: i32, %arg1: memref<16x8xf32, #tpu.memory_space<vmem>>, %arg2: memref<8x16xf32, #tpu.memory_space<vmem>>, %arg3: memref<1x16x8xf32, #tpu.memory_space<vmem>>, %arg4: memref<24x8x128xf32, #tpu.memory_space<vmem>>, %arg5: memref<8x128xf32, #tpu.memory_space<vmem>>, %arg6: memref<1x16x128xf32, #tpu.memory_space<vmem>>) attributes {dimension_semantics = [#tpu.dimension_semantics<parallel>], iteration_bounds = array<i64: 2>, scalar_prefetch = 0 : i64, scratch_operands = 0 : i64, tpu.core_type = #tpu.core_type<tc>, window_params = [{pipeline_mode = #tpu.pipeline_mode<synchronous>, transform_indices = @transform_0, window_bounds = array<i64: 16, 8>}, {pipeline_mode = #tpu.pipeline_mode<synchronous>, transform_indices = @transform_1, window_bounds = array<i64: 8, 16>}, {transform_indices = @transform_2, window_bounds = array<i64: 1, 16, 8>}, {pipeline_mode = #tpu.pipeline_mode<synchronous>, transform_indices = @transform_3, window_bounds = array<i64: 24, 8, 128>}, {pipeline_mode = #tpu.pipeline_mode<synchronous>, transform_indices = @transform_4, window_bounds = array<i64: 8, 128>}, {transform_indices = @transform_5, window_bounds = array<i64: 1, 16, 128>}]} {
    %c0 = arith.constant 0 : index
    %c0_0 = arith.constant 0 : index
    %0 = vector.load %arg1[%c0, %c0_0] : memref<16x8xf32, #tpu.memory_space<vmem>>, vector<16x8xf32>
    %c0_1 = arith.constant 0 : index
    %c0_2 = arith.constant 0 : index
    %c0_3 = arith.constant 0 : index
    %1 = vector.load %arg3[%c0_1, %c0_2, %c0_3] : memref<1x16x8xf32, #tpu.memory_space<vmem>>, vector<1x16x8xf32>
    %2 = vector.shape_cast %1 : vector<1x16x8xf32> to vector<16x8xf32>
    %c0_4 = arith.constant 0 : index
    %c0_5 = arith.constant 0 : index
    %3 = vector.load %arg2[%c0_4, %c0_5] : memref<8x16xf32, #tpu.memory_space<vmem>>, vector<8x16xf32>
    %cst = arith.constant dense<0.000000e+00> : vector<16x16xf32>
    %4 = tpu.matmul %0, %3, %cst {dimension_numbers = #tpu.dot_dimension_numbers<[1], [0], [0], [1], [0, 0, 1, 1], [], []>} : vector<16x8xf32>, vector<8x16xf32>, vector<16x16xf32> -> vector<16x16xf32>
    %cst_6 = arith.constant 0.000000e+00 : f32
    %5 = vector.broadcast %cst_6 : f32 to vector<16x16xf32>
    %6 = arith.maximumf %4, %5 : vector<16x16xf32>
    %cst_7 = arith.constant dense<0xFF800000> : vector<16xf32>
    %7 = vector.multi_reduction <maximumf>, %6, %cst_7 [1] : vector<16x16xf32> to vector<16xf32>
    %8 = vector.shape_cast %7 : vector<16xf32> to vector<16x1xf32>
    %9 = vector.broadcast %8 : vector<16x1xf32> to vector<16x16xf32>
    %10 = arith.subf %6, %9 : vector<16x16xf32>
    %11 = math.exp %10 : vector<16x16xf32>
    %cst_8 = arith.constant dense<0.000000e+00> : vector<16xf32>
    %12 = vector.multi_reduction <add>, %11, %cst_8 [1] : vector<16x16xf32> to vector<16xf32>
    %13 = vector.shape_cast %12 : vector<16xf32> to vector<16x1xf32>
    %14 = vector.broadcast %13 : vector<16x1xf32> to vector<16x16xf32>
    %15 = arith.divf %11, %14 : vector<16x16xf32>
    %cst_9 = arith.constant dense<0.000000e+00> : vector<16x8xf32>
    %16 = tpu.matmul %15, %2, %cst_9 {dimension_numbers = #tpu.dot_dimension_numbers<[1], [0], [0], [1], [0, 0, 1, 1], [], []>} : vector<16x16xf32>, vector<16x8xf32>, vector<16x8xf32> -> vector<16x8xf32>
    %17 = tpu.iota {dimensions = array<i32: 0>} : vector<16x16xi32>
    %18 = tpu.iota {dimensions = array<i32: 1>} : vector<16x16xi32>
    %19 = arith.cmpi eq, %17, %18 : vector<16x16xi32>
    %20 = arith.extui %19 : vector<16x16xi1> to vector<16x16xi32>
    %21 = arith.sitofp %20 : vector<16x16xi32> to vector<16x16xf32>
    %cst_10 = arith.constant dense<0.000000e+00> : vector<16x16xf32>
    %22 = tpu.matmul %15, %15, %cst_10 {dimension_numbers = #tpu.dot_dimension_numbers<[1], [0], [0], [1], [0, 0, 1, 1], [], []>} : vector<16x16xf32>, vector<16x16xf32>, vector<16x16xf32> -> vector<16x16xf32>
    %cst_11 = arith.constant 2.000000e+00 : f32
    %23 = vector.broadcast %cst_11 : f32 to vector<16x16xf32>
    %24 = arith.mulf %23, %22 : vector<16x16xf32>
    %25 = arith.subf %24, %21 : vector<16x16xf32>
    %cst_12 = arith.constant dense<0.000000e+00> : vector<16x8xf32>
    %26 = tpu.matmul %25, %2, %cst_12 {dimension_numbers = #tpu.dot_dimension_numbers<[1], [0], [0], [1], [0, 0, 1, 1], [], []>} : vector<16x16xf32>, vector<16x8xf32>, vector<16x8xf32> -> vector<16x8xf32>
    %c0_13 = arith.constant 0 : index
    %c0_14 = arith.constant 0 : index
    %27 = vector.load %arg5[%c0_13, %c0_14] : memref<8x128xf32, #tpu.memory_space<vmem>>, vector<8x128xf32>
    %cst_15 = arith.constant dense<0.000000e+00> : vector<16x128xf32>
    %28 = tpu.matmul %0, %27, %cst_15 {dimension_numbers = #tpu.dot_dimension_numbers<[1], [0], [0], [1], [0, 0, 1, 1], [], []>} : vector<16x8xf32>, vector<8x128xf32>, vector<16x128xf32> -> vector<16x128xf32>
    %c0_16 = arith.constant 0 : index
    %c0_17 = arith.constant 0 : index
    %c0_18 = arith.constant 0 : index
    %29 = vector.load %arg4[%c0_16, %c0_17, %c0_18] : memref<24x8x128xf32, #tpu.memory_space<vmem>>, vector<1x8x128xf32>
    %30 = vector.shape_cast %29 : vector<1x8x128xf32> to vector<8x128xf32>
    %cst_19 = arith.constant dense<0.000000e+00> : vector<16x128xf32>
    %31 = tpu.matmul %2, %30, %cst_19 {dimension_numbers = #tpu.dot_dimension_numbers<[1], [0], [0], [1], [0, 0, 1, 1], [], []>} : vector<16x8xf32>, vector<8x128xf32>, vector<16x128xf32> -> vector<16x128xf32>
    %c1 = arith.constant 1 : index
    %c0_20 = arith.constant 0 : index
    %c0_21 = arith.constant 0 : index
    %32 = vector.load %arg4[%c1, %c0_20, %c0_21] : memref<24x8x128xf32, #tpu.memory_space<vmem>>, vector<1x8x128xf32>
    %33 = vector.shape_cast %32 : vector<1x8x128xf32> to vector<8x128xf32>
    %cst_22 = arith.constant dense<0.000000e+00> : vector<16x128xf32>
    %34 = tpu.matmul %16, %33, %cst_22 {dimension_numbers = #tpu.dot_dimension_numbers<[1], [0], [0], [1], [0, 0, 1, 1], [], []>} : vector<16x8xf32>, vector<8x128xf32>, vector<16x128xf32> -> vector<16x128xf32>
    %35 = arith.addf %31, %34 : vector<16x128xf32>
    %c2 = arith.constant 2 : index
    %c0_23 = arith.constant 0 : index
    %c0_24 = arith.constant 0 : index
    %36 = vector.load %arg4[%c2, %c0_23, %c0_24] : memref<24x8x128xf32, #tpu.memory_space<vmem>>, vector<1x8x128xf32>
    %37 = vector.shape_cast %36 : vector<1x8x128xf32> to vector<8x128xf32>
    %cst_25 = arith.constant dense<0.000000e+00> : vector<16x128xf32>
    %38 = tpu.matmul %26, %37, %cst_25 {dimension_numbers = #tpu.dot_dimension_numbers<[1], [0], [0], [1], [0, 0, 1, 1], [], []>} : vector<16x8xf32>, vector<8x128xf32>, vector<16x128xf32> -> vector<16x128xf32>
    %39 = arith.addf %35, %38 : vector<16x128xf32>
    %40 = vector.extract_strided_slice %0 {offsets = [0, 0], sizes = [16, 1], strides = [1, 1]} : vector<16x8xf32> to vector<16x1xf32>
    %41 = vector.broadcast %40 : vector<16x1xf32> to vector<16x128xf32>
    %42 = arith.mulf %41, %39 : vector<16x128xf32>
    %43 = arith.addf %28, %42 : vector<16x128xf32>
    %c3 = arith.constant 3 : index
    %c0_26 = arith.constant 0 : index
    %c0_27 = arith.constant 0 : index
    %44 = vector.load %arg4[%c3, %c0_26, %c0_27] : memref<24x8x128xf32, #tpu.memory_space<vmem>>, vector<1x8x128xf32>
    %45 = vector.shape_cast %44 : vector<1x8x128xf32> to vector<8x128xf32>
    %cst_28 = arith.constant dense<0.000000e+00> : vector<16x128xf32>
    %46 = tpu.matmul %2, %45, %cst_28 {dimension_numbers = #tpu.dot_dimension_numbers<[1], [0], [0], [1], [0, 0, 1, 1], [], []>} : vector<16x8xf32>, vector<8x128xf32>, vector<16x128xf32> -> vector<16x128xf32>
    %c4 = arith.constant 4 : index
    %c0_29 = arith.constant 0 : index
    %c0_30 = arith.constant 0 : index
    %47 = vector.load %arg4[%c4, %c0_29, %c0_30] : memref<24x8x128xf32, #tpu.memory_space<vmem>>, vector<1x8x128xf32>
    %48 = vector.shape_cast %47 : vector<1x8x128xf32> to vector<8x128xf32>
    %cst_31 = arith.constant dense<0.000000e+00> : vector<16x128xf32>
    %49 = tpu.matmul %16, %48, %cst_31 {dimension_numbers = #tpu.dot_dimension_numbers<[1], [0], [0], [1], [0, 0, 1, 1], [], []>} : vector<16x8xf32>, vector<8x128xf32>, vector<16x128xf32> -> vector<16x128xf32>
    %50 = arith.addf %46, %49 : vector<16x128xf32>
    %c5 = arith.constant 5 : index
    %c0_32 = arith.constant 0 : index
    %c0_33 = arith.constant 0 : index
    %51 = vector.load %arg4[%c5, %c0_32, %c0_33] : memref<24x8x128xf32, #tpu.memory_space<vmem>>, vector<1x8x128xf32>
    %52 = vector.shape_cast %51 : vector<1x8x128xf32> to vector<8x128xf32>
    %cst_34 = arith.constant dense<0.000000e+00> : vector<16x128xf32>
    %53 = tpu.matmul %26, %52, %cst_34 {dimension_numbers = #tpu.dot_dimension_numbers<[1], [0], [0], [1], [0, 0, 1, 1], [], []>} : vector<16x8xf32>, vector<8x128xf32>, vector<16x128xf32> -> vector<16x128xf32>
    %54 = arith.addf %50, %53 : vector<16x128xf32>
    %55 = vector.extract_strided_slice %0 {offsets = [0, 1], sizes = [16, 1], strides = [1, 1]} : vector<16x8xf32> to vector<16x1xf32>
    %56 = vector.broadcast %55 : vector<16x1xf32> to vector<16x128xf32>
    %57 = arith.mulf %56, %54 : vector<16x128xf32>
    %58 = arith.addf %43, %57 : vector<16x128xf32>
    %c6 = arith.constant 6 : index
    %c0_35 = arith.constant 0 : index
    %c0_36 = arith.constant 0 : index
    %59 = vector.load %arg4[%c6, %c0_35, %c0_36] : memref<24x8x128xf32, #tpu.memory_space<vmem>>, vector<1x8x128xf32>
    %60 = vector.shape_cast %59 : vector<1x8x128xf32> to vector<8x128xf32>
    %cst_37 = arith.constant dense<0.000000e+00> : vector<16x128xf32>
    %61 = tpu.matmul %2, %60, %cst_37 {dimension_numbers = #tpu.dot_dimension_numbers<[1], [0], [0], [1], [0, 0, 1, 1], [], []>} : vector<16x8xf32>, vector<8x128xf32>, vector<16x128xf32> -> vector<16x128xf32>
    %c7 = arith.constant 7 : index
    %c0_38 = arith.constant 0 : index
    %c0_39 = arith.constant 0 : index
    %62 = vector.load %arg4[%c7, %c0_38, %c0_39] : memref<24x8x128xf32, #tpu.memory_space<vmem>>, vector<1x8x128xf32>
    %63 = vector.shape_cast %62 : vector<1x8x128xf32> to vector<8x128xf32>
    %cst_40 = arith.constant dense<0.000000e+00> : vector<16x128xf32>
    %64 = tpu.matmul %16, %63, %cst_40 {dimension_numbers = #tpu.dot_dimension_numbers<[1], [0], [0], [1], [0, 0, 1, 1], [], []>} : vector<16x8xf32>, vector<8x128xf32>, vector<16x128xf32> -> vector<16x128xf32>
    %65 = arith.addf %61, %64 : vector<16x128xf32>
    %c8 = arith.constant 8 : index
    %c0_41 = arith.constant 0 : index
    %c0_42 = arith.constant 0 : index
    %66 = vector.load %arg4[%c8, %c0_41, %c0_42] : memref<24x8x128xf32, #tpu.memory_space<vmem>>, vector<1x8x128xf32>
    %67 = vector.shape_cast %66 : vector<1x8x128xf32> to vector<8x128xf32>
    %cst_43 = arith.constant dense<0.000000e+00> : vector<16x128xf32>
    %68 = tpu.matmul %26, %67, %cst_43 {dimension_numbers = #tpu.dot_dimension_numbers<[1], [0], [0], [1], [0, 0, 1, 1], [], []>} : vector<16x8xf32>, vector<8x128xf32>, vector<16x128xf32> -> vector<16x128xf32>
    %69 = arith.addf %65, %68 : vector<16x128xf32>
    %70 = vector.extract_strided_slice %0 {offsets = [0, 2], sizes = [16, 1], strides = [1, 1]} : vector<16x8xf32> to vector<16x1xf32>
    %71 = vector.broadcast %70 : vector<16x1xf32> to vector<16x128xf32>
    %72 = arith.mulf %71, %69 : vector<16x128xf32>
    %73 = arith.addf %58, %72 : vector<16x128xf32>
    %c9 = arith.constant 9 : index
    %c0_44 = arith.constant 0 : index
    %c0_45 = arith.constant 0 : index
    %74 = vector.load %arg4[%c9, %c0_44, %c0_45] : memref<24x8x128xf32, #tpu.memory_space<vmem>>, vector<1x8x128xf32>
    %75 = vector.shape_cast %74 : vector<1x8x128xf32> to vector<8x128xf32>
    %cst_46 = arith.constant dense<0.000000e+00> : vector<16x128xf32>
    %76 = tpu.matmul %2, %75, %cst_46 {dimension_numbers = #tpu.dot_dimension_numbers<[1], [0], [0], [1], [0, 0, 1, 1], [], []>} : vector<16x8xf32>, vector<8x128xf32>, vector<16x128xf32> -> vector<16x128xf32>
    %c10 = arith.constant 10 : index
    %c0_47 = arith.constant 0 : index
    %c0_48 = arith.constant 0 : index
    %77 = vector.load %arg4[%c10, %c0_47, %c0_48] : memref<24x8x128xf32, #tpu.memory_space<vmem>>, vector<1x8x128xf32>
    %78 = vector.shape_cast %77 : vector<1x8x128xf32> to vector<8x128xf32>
    %cst_49 = arith.constant dense<0.000000e+00> : vector<16x128xf32>
    %79 = tpu.matmul %16, %78, %cst_49 {dimension_numbers = #tpu.dot_dimension_numbers<[1], [0], [0], [1], [0, 0, 1, 1], [], []>} : vector<16x8xf32>, vector<8x128xf32>, vector<16x128xf32> -> vector<16x128xf32>
    %80 = arith.addf %76, %79 : vector<16x128xf32>
    %c11 = arith.constant 11 : index
    %c0_50 = arith.constant 0 : index
    %c0_51 = arith.constant 0 : index
    %81 = vector.load %arg4[%c11, %c0_50, %c0_51] : memref<24x8x128xf32, #tpu.memory_space<vmem>>, vector<1x8x128xf32>
    %82 = vector.shape_cast %81 : vector<1x8x128xf32> to vector<8x128xf32>
    %cst_52 = arith.constant dense<0.000000e+00> : vector<16x128xf32>
    %83 = tpu.matmul %26, %82, %cst_52 {dimension_numbers = #tpu.dot_dimension_numbers<[1], [0], [0], [1], [0, 0, 1, 1], [], []>} : vector<16x8xf32>, vector<8x128xf32>, vector<16x128xf32> -> vector<16x128xf32>
    %84 = arith.addf %80, %83 : vector<16x128xf32>
    %85 = vector.extract_strided_slice %0 {offsets = [0, 3], sizes = [16, 1], strides = [1, 1]} : vector<16x8xf32> to vector<16x1xf32>
    %86 = vector.broadcast %85 : vector<16x1xf32> to vector<16x128xf32>
    %87 = arith.mulf %86, %84 : vector<16x128xf32>
    %88 = arith.addf %73, %87 : vector<16x128xf32>
    %c12 = arith.constant 12 : index
    %c0_53 = arith.constant 0 : index
    %c0_54 = arith.constant 0 : index
    %89 = vector.load %arg4[%c12, %c0_53, %c0_54] : memref<24x8x128xf32, #tpu.memory_space<vmem>>, vector<1x8x128xf32>
    %90 = vector.shape_cast %89 : vector<1x8x128xf32> to vector<8x128xf32>
    %cst_55 = arith.constant dense<0.000000e+00> : vector<16x128xf32>
    %91 = tpu.matmul %2, %90, %cst_55 {dimension_numbers = #tpu.dot_dimension_numbers<[1], [0], [0], [1], [0, 0, 1, 1], [], []>} : vector<16x8xf32>, vector<8x128xf32>, vector<16x128xf32> -> vector<16x128xf32>
    %c13 = arith.constant 13 : index
    %c0_56 = arith.constant 0 : index
    %c0_57 = arith.constant 0 : index
    %92 = vector.load %arg4[%c13, %c0_56, %c0_57] : memref<24x8x128xf32, #tpu.memory_space<vmem>>, vector<1x8x128xf32>
    %93 = vector.shape_cast %92 : vector<1x8x128xf32> to vector<8x128xf32>
    %cst_58 = arith.constant dense<0.000000e+00> : vector<16x128xf32>
    %94 = tpu.matmul %16, %93, %cst_58 {dimension_numbers = #tpu.dot_dimension_numbers<[1], [0], [0], [1], [0, 0, 1, 1], [], []>} : vector<16x8xf32>, vector<8x128xf32>, vector<16x128xf32> -> vector<16x128xf32>
    %95 = arith.addf %91, %94 : vector<16x128xf32>
    %c14 = arith.constant 14 : index
    %c0_59 = arith.constant 0 : index
    %c0_60 = arith.constant 0 : index
    %96 = vector.load %arg4[%c14, %c0_59, %c0_60] : memref<24x8x128xf32, #tpu.memory_space<vmem>>, vector<1x8x128xf32>
    %97 = vector.shape_cast %96 : vector<1x8x128xf32> to vector<8x128xf32>
    %cst_61 = arith.constant dense<0.000000e+00> : vector<16x128xf32>
    %98 = tpu.matmul %26, %97, %cst_61 {dimension_numbers = #tpu.dot_dimension_numbers<[1], [0], [0], [1], [0, 0, 1, 1], [], []>} : vector<16x8xf32>, vector<8x128xf32>, vector<16x128xf32> -> vector<16x128xf32>
    %99 = arith.addf %95, %98 : vector<16x128xf32>
    %100 = vector.extract_strided_slice %0 {offsets = [0, 4], sizes = [16, 1], strides = [1, 1]} : vector<16x8xf32> to vector<16x1xf32>
    %101 = vector.broadcast %100 : vector<16x1xf32> to vector<16x128xf32>
    %102 = arith.mulf %101, %99 : vector<16x128xf32>
    %103 = arith.addf %88, %102 : vector<16x128xf32>
    %c15 = arith.constant 15 : index
    %c0_62 = arith.constant 0 : index
    %c0_63 = arith.constant 0 : index
    %104 = vector.load %arg4[%c15, %c0_62, %c0_63] : memref<24x8x128xf32, #tpu.memory_space<vmem>>, vector<1x8x128xf32>
    %105 = vector.shape_cast %104 : vector<1x8x128xf32> to vector<8x128xf32>
    %cst_64 = arith.constant dense<0.000000e+00> : vector<16x128xf32>
    %106 = tpu.matmul %2, %105, %cst_64 {dimension_numbers = #tpu.dot_dimension_numbers<[1], [0], [0], [1], [0, 0, 1, 1], [], []>} : vector<16x8xf32>, vector<8x128xf32>, vector<16x128xf32> -> vector<16x128xf32>
    %c16 = arith.constant 16 : index
    %c0_65 = arith.constant 0 : index
    %c0_66 = arith.constant 0 : index
    %107 = vector.load %arg4[%c16, %c0_65, %c0_66] : memref<24x8x128xf32, #tpu.memory_space<vmem>>, vector<1x8x128xf32>
    %108 = vector.shape_cast %107 : vector<1x8x128xf32> to vector<8x128xf32>
    %cst_67 = arith.constant dense<0.000000e+00> : vector<16x128xf32>
    %109 = tpu.matmul %16, %108, %cst_67 {dimension_numbers = #tpu.dot_dimension_numbers<[1], [0], [0], [1], [0, 0, 1, 1], [], []>} : vector<16x8xf32>, vector<8x128xf32>, vector<16x128xf32> -> vector<16x128xf32>
    %110 = arith.addf %106, %109 : vector<16x128xf32>
    %c17 = arith.constant 17 : index
    %c0_68 = arith.constant 0 : index
    %c0_69 = arith.constant 0 : index
    %111 = vector.load %arg4[%c17, %c0_68, %c0_69] : memref<24x8x128xf32, #tpu.memory_space<vmem>>, vector<1x8x128xf32>
    %112 = vector.shape_cast %111 : vector<1x8x128xf32> to vector<8x128xf32>
    %cst_70 = arith.constant dense<0.000000e+00> : vector<16x128xf32>
    %113 = tpu.matmul %26, %112, %cst_70 {dimension_numbers = #tpu.dot_dimension_numbers<[1], [0], [0], [1], [0, 0, 1, 1], [], []>} : vector<16x8xf32>, vector<8x128xf32>, vector<16x128xf32> -> vector<16x128xf32>
    %114 = arith.addf %110, %113 : vector<16x128xf32>
    %115 = vector.extract_strided_slice %0 {offsets = [0, 5], sizes = [16, 1], strides = [1, 1]} : vector<16x8xf32> to vector<16x1xf32>
    %116 = vector.broadcast %115 : vector<16x1xf32> to vector<16x128xf32>
    %117 = arith.mulf %116, %114 : vector<16x128xf32>
    %118 = arith.addf %103, %117 : vector<16x128xf32>
    %c18 = arith.constant 18 : index
    %c0_71 = arith.constant 0 : index
    %c0_72 = arith.constant 0 : index
    %119 = vector.load %arg4[%c18, %c0_71, %c0_72] : memref<24x8x128xf32, #tpu.memory_space<vmem>>, vector<1x8x128xf32>
    %120 = vector.shape_cast %119 : vector<1x8x128xf32> to vector<8x128xf32>
    %cst_73 = arith.constant dense<0.000000e+00> : vector<16x128xf32>
    %121 = tpu.matmul %2, %120, %cst_73 {dimension_numbers = #tpu.dot_dimension_numbers<[1], [0], [0], [1], [0, 0, 1, 1], [], []>} : vector<16x8xf32>, vector<8x128xf32>, vector<16x128xf32> -> vector<16x128xf32>
    %c19 = arith.constant 19 : index
    %c0_74 = arith.constant 0 : index
    %c0_75 = arith.constant 0 : index
    %122 = vector.load %arg4[%c19, %c0_74, %c0_75] : memref<24x8x128xf32, #tpu.memory_space<vmem>>, vector<1x8x128xf32>
    %123 = vector.shape_cast %122 : vector<1x8x128xf32> to vector<8x128xf32>
    %cst_76 = arith.constant dense<0.000000e+00> : vector<16x128xf32>
    %124 = tpu.matmul %16, %123, %cst_76 {dimension_numbers = #tpu.dot_dimension_numbers<[1], [0], [0], [1], [0, 0, 1, 1], [], []>} : vector<16x8xf32>, vector<8x128xf32>, vector<16x128xf32> -> vector<16x128xf32>
    %125 = arith.addf %121, %124 : vector<16x128xf32>
    %c20 = arith.constant 20 : index
    %c0_77 = arith.constant 0 : index
    %c0_78 = arith.constant 0 : index
    %126 = vector.load %arg4[%c20, %c0_77, %c0_78] : memref<24x8x128xf32, #tpu.memory_space<vmem>>, vector<1x8x128xf32>
    %127 = vector.shape_cast %126 : vector<1x8x128xf32> to vector<8x128xf32>
    %cst_79 = arith.constant dense<0.000000e+00> : vector<16x128xf32>
    %128 = tpu.matmul %26, %127, %cst_79 {dimension_numbers = #tpu.dot_dimension_numbers<[1], [0], [0], [1], [0, 0, 1, 1], [], []>} : vector<16x8xf32>, vector<8x128xf32>, vector<16x128xf32> -> vector<16x128xf32>
    %129 = arith.addf %125, %128 : vector<16x128xf32>
    %130 = vector.extract_strided_slice %0 {offsets = [0, 6], sizes = [16, 1], strides = [1, 1]} : vector<16x8xf32> to vector<16x1xf32>
    %131 = vector.broadcast %130 : vector<16x1xf32> to vector<16x128xf32>
    %132 = arith.mulf %131, %129 : vector<16x128xf32>
    %133 = arith.addf %118, %132 : vector<16x128xf32>
    %c21 = arith.constant 21 : index
    %c0_80 = arith.constant 0 : index
    %c0_81 = arith.constant 0 : index
    %134 = vector.load %arg4[%c21, %c0_80, %c0_81] : memref<24x8x128xf32, #tpu.memory_space<vmem>>, vector<1x8x128xf32>
    %135 = vector.shape_cast %134 : vector<1x8x128xf32> to vector<8x128xf32>
    %cst_82 = arith.constant dense<0.000000e+00> : vector<16x128xf32>
    %136 = tpu.matmul %2, %135, %cst_82 {dimension_numbers = #tpu.dot_dimension_numbers<[1], [0], [0], [1], [0, 0, 1, 1], [], []>} : vector<16x8xf32>, vector<8x128xf32>, vector<16x128xf32> -> vector<16x128xf32>
    %c22 = arith.constant 22 : index
    %c0_83 = arith.constant 0 : index
    %c0_84 = arith.constant 0 : index
    %137 = vector.load %arg4[%c22, %c0_83, %c0_84] : memref<24x8x128xf32, #tpu.memory_space<vmem>>, vector<1x8x128xf32>
    %138 = vector.shape_cast %137 : vector<1x8x128xf32> to vector<8x128xf32>
    %cst_85 = arith.constant dense<0.000000e+00> : vector<16x128xf32>
    %139 = tpu.matmul %16, %138, %cst_85 {dimension_numbers = #tpu.dot_dimension_numbers<[1], [0], [0], [1], [0, 0, 1, 1], [], []>} : vector<16x8xf32>, vector<8x128xf32>, vector<16x128xf32> -> vector<16x128xf32>
    %140 = arith.addf %136, %139 : vector<16x128xf32>
    %c23 = arith.constant 23 : index
    %c0_86 = arith.constant 0 : index
    %c0_87 = arith.constant 0 : index
    %141 = vector.load %arg4[%c23, %c0_86, %c0_87] : memref<24x8x128xf32, #tpu.memory_space<vmem>>, vector<1x8x128xf32>
    %142 = vector.shape_cast %141 : vector<1x8x128xf32> to vector<8x128xf32>
    %cst_88 = arith.constant dense<0.000000e+00> : vector<16x128xf32>
    %143 = tpu.matmul %26, %142, %cst_88 {dimension_numbers = #tpu.dot_dimension_numbers<[1], [0], [0], [1], [0, 0, 1, 1], [], []>} : vector<16x8xf32>, vector<8x128xf32>, vector<16x128xf32> -> vector<16x128xf32>
    %144 = arith.addf %140, %143 : vector<16x128xf32>
    %145 = vector.extract_strided_slice %0 {offsets = [0, 7], sizes = [16, 1], strides = [1, 1]} : vector<16x8xf32> to vector<16x1xf32>
    %146 = vector.broadcast %145 : vector<16x1xf32> to vector<16x128xf32>
    %147 = arith.mulf %146, %144 : vector<16x128xf32>
    %148 = arith.addf %133, %147 : vector<16x128xf32>
    %c0_89 = arith.constant 0 : index
    %c0_90 = arith.constant 0 : index
    %c0_91 = arith.constant 0 : index
    %149 = vector.load %arg6[%c0_89, %c0_90, %c0_91] : memref<1x16x128xf32, #tpu.memory_space<vmem>>, vector<1x16x128xf32>
    %150 = vector.shape_cast %149 : vector<1x16x128xf32> to vector<16x128xf32>
    %151 = vector.shape_cast %148 : vector<16x128xf32> to vector<1x16x128xf32>
    tpu.vector_store %arg6[%c0_89, %c0_90, %c0_91], %151 {strides = array<i32>} : memref<1x16x128xf32, #tpu.memory_space<vmem>>, vector<1x16x128xf32>,
    return
  }
  func.func @transform_0(%arg0: i32) -> (i32, i32) {
    %c0_i32 = arith.constant 0 : i32
    %c0_i32_0 = arith.constant 0 : i32
    %c0_i32_1 = arith.constant 0 : i32
    return %c0_i32, %c0_i32_0 : i32, i32
  }
  func.func @transform_1(%arg0: i32) -> (i32, i32) {
    %c0_i32 = arith.constant 0 : i32
    %c0_i32_0 = arith.constant 0 : i32
    %c0_i32_1 = arith.constant 0 : i32
    return %c0_i32, %c0_i32_0 : i32, i32
  }
  func.func @transform_2(%arg0: i32) -> (i32, i32, i32) {
    %c0_i32 = arith.constant 0 : i32
    %c0_i32_0 = arith.constant 0 : i32
    %c0_i32_1 = arith.constant 0 : i32
    return %arg0, %c0_i32, %c0_i32_0 : i32, i32, i32
  }
  func.func @transform_3(%arg0: i32) -> (i32, i32, i32) {
    %c0_i32 = arith.constant 0 : i32
    %c0_i32_0 = arith.constant 0 : i32
    %c0_i32_1 = arith.constant 0 : i32
    %c0_i32_2 = arith.constant 0 : i32
    return %c0_i32, %c0_i32_0, %c0_i32_1 : i32, i32, i32
  }
  func.func @transform_4(%arg0: i32) -> (i32, i32) {
    %c0_i32 = arith.constant 0 : i32
    %c0_i32_0 = arith.constant 0 : i32
    %c0_i32_1 = arith.constant 0 : i32
    return %c0_i32, %c0_i32_0 : i32, i32
  }
  func.func @transform_5(%arg0: i32) -> (i32, i32, i32) {
    %c0_i32 = arith.constant 0 : i32
    %c0_i32_0 = arith.constant 0 : i32
    %c0_i32_1 = arith.constant 0 : i32
    return %arg0, %c0_i32, %c0_i32_0 : i32, i32, i32
  }
}

</mosaic_0001>

<bundles_post_ra>
// kernel: tpu_custom_call.1
= control target key start
LH: loop header
LB: loop body
LE: loop exit
PB: predicated region body
PF: predicated region fallthrough
CT: control target
= control target key end

     0   :  { %10 = vsyncpa [#allocation3], 0  ;;  %s3585_s0 = inlined_call_operand.vmem [shape: f32[16,8], index: 0, kind: input, shape index: {}]   ;;  %s3586_s1 = inlined_call_operand.vmem [shape: f32[8,16], index: 1, kind: input, shape index: {}]   ;;  %s3587_s2 = inlined_call_operand.vmem [shape: f32[2,16,8], index: 2, kind: input, shape index: {}]   ;;  %s3588_s3 = inlined_call_operand.hbm [shape: f32[24,8,128], index: 3, kind: input, shape index: {}]   ;;  %s3589_s4 = inlined_call_operand.vmem [shape: f32[8,128], index: 4, kind: input, shape index: {}]   ;;  %s3590_s5 = inlined_call_operand.hbm [shape: f32[2,16,128], index: 5, kind: output, shape index: {}]  }
   0x1   :  { %11 = vsyncpa [#allocation4], 0 }
   0x2   :  { %13 = vsyncpa [#allocation4 + $0x1], 0  ;;  %s3280_s18 = smov 0   ;;  %s3282_s19 = smov 0  }
   0x3   :  { %s3284_s20 = smov 0   ;;  %s3286_s21 = smov 0  }
   0x4 LB: > { %s3301_s22 = sadd.s32 4294967295, %s3233_s21   ;;  %s2743_s23 = sadd.s32 4294967294, %s3233_s21   ;;  %s3233_s21 = sphi %s3286_s21, %s3598_s21   ;;  %s3229_s20 = sphi %s3284_s20, %s3597_s20   ;;  %s3225_s19 = sphi %s3282_s19, %s3596_s19   ;;  %s3221_s18 = sphi %s3280_s18, %s3595_s18  }
   0x5   : > { %s3305_s24 = sadd.s32 1, %s3233_s21   ;;  %s136_s25 = sadd.s32 1, %s3229_s20 }
   0x6   : > { %s133_s26 = ssub.s32 %s3233_s21, %s3305_s24  ;;  %p146_p0 = scmp.ne.s32.totalorder %s3229_s20, %s3225_s19 }
   0x7   : > { %p134_p1 = scmp.eq.s32.totalorder %s133_s26, 0  ;;  %p147_p2 = scmp.eq.s32.totalorder %s3301_s22, 1 }
   0x8   : > { %p152_p3 = scmp.ne.s32.totalorder %s3225_s19, %s3221_s18  ;;  %p153_p4 = scmp.eq.s32.totalorder %s2743_s23, 1 }
   0x9   : > { %s3316_s27 = scalar_select %p134_p1, %s3229_s20, %s136_s25  }
   0xa   : > { %p3318_p5 = por %p147_p2, %p146_p0  ;;  %p3322_p6 = por %p153_p4, %p152_p3 }
   0xb   : > { %p2744_p7 = scmp.ge.s32.totalorder %s3233_s21, 1  ;;  %p160_p8 = scmp.lt.s32.totalorder %s3233_s21, 3 }
   0xc   : > { %s3592_s29 = scalar_select %p3322_p6, 1, 0 }
   0xd   : > { %p3074_p9 = scmp.eq.s32.totalorder %s3301_s22, 0  ;;  %p3329_p10 = pnand %p2744_p7, %p160_p8 }
   0xe   : > { %s3235_s6 = smov [#allocation2]  }
   0xf   : > { %s178_s7 = sshll.u32 %s3235_s6, 4  ;;  %p3066_p11 = pneg %p3329_p10  ;;  %s179_s7 = int_to_ptr.vmem [resolvable:$true] %s178_s7 }
  0x10   : > { %s3154_s8 = scalar_lea.vmem %s179_s7, 3072  ;;  %p3162_p3 = scmp.lt.s32.totalorder %s179_s7, %s179_s7 }
  0x11   : > { %p3067_p12 = pnand %p3074_p9, %p3066_p11  ;;  %p3155_p0 = scmp.ne.s32.totalorder %s179_s7, %s3154_s8 }
  0x12   : > { %p3163_p4 = scmp.lt.s32.totalorder %s3154_s8, %s3154_s8 }
  0x13   : > { %p3145_p13 = pneg %p3067_p12 }
  0x14   : > { %p3164_p6 = por %p3163_p4, %p3162_p3 }
  0x15   : > { %p3157_p1 = pnand %p3155_p0, %p3145_p13 }
  0x17   : > { %p3158_p2 = pneg %p3157_p1 }
  0x19   : > { %p3165_p7 = pnand %p3164_p6, %p3158_p2 }
  0x1b   : > { %3168 = shalt.err (!%p3165_p7)
}
  0x1c   : > { %s3236_s9 = smov 128   ;;  %s3237_s10 = smov 8  }
  0x1d   : > { %3069 = dma.hbm_to_vmem [thread:$0]  (!%p3067_p12), %s3588_s3, 3072, %s179_s7, [#allocation3], %s3236_s9, %s3236_s9, %s3237_s10  }
  0x1e   : > { %205 = sbr.rel (%p3329_p10) target bundleno = 1208 (0x4b8), region = 40 }
  0x23   : > { %3212 = dma.done.wait (%p3074_p9), [#allocation3], 3072  }
  0x24   : > { %3214 = vsyncadd (%p3074_p9), [#allocation3], 4294964224  ;;  %vm243_vm0 = vcmask 64512   ;;  %v242_v0 = vld [vmem:[%s3586_s1] sm:$0xff]  ;;  %v3357_v2 = vld [vmem:[%s3585_s0 + $0x8] sm:$0xff]  ;;  %vm327_vm1 = vcmask 130048   ;;  %v431_v29 = vlaneseq }
  0x25   : > { %v3352_v1 = vld [vmem:[%s3585_s0] sm:$0xff]  ;;  %2909 = vmatprep.subr.mxu0 %v242_v0  ;;  %p233_p6 = scmp.lt.s32.totalorder %s3301_s22, 1  ;;  %v605_v27 = vld [vmem:[#allocation2 + $0x8] sm:$0xff]  ;;  %v3238_v37 = vmov 0.0   ;;  %v939_v45 = vld [vmem:[#allocation2 + $0x18] sm:$0xff]  ;;  %v3239_v51 = vmov 0  }
  0x26   : > { %2911 = vmatprep.mubr.msk.f32.mxu0 %vm243_vm0, %v3352_v1  ;;  %2910 = vmatpush3.msra.mxu0 %v242_v0  ;;  %v603_v28 = vld [vmem:[#allocation2] sm:$0xff]  ;;  %v432_v30 = vshrl.u32 %v431_v29, 7  ;;  %v435_v32 = vand.u32 127, %v431_v29  ;;  %v1186_v46 = vld [vmem:[#allocation2 + $0x38] sm:$0xff]  ;;  %v769_v47 = vld [vmem:[#allocation2 + $0x10] sm:$0xff]  ;;  %v3240_v52 = vmov 1  }
  0x27   : > { %2912 = vmatmul.mubr.msk.f32.vlgmr.msra.gmra.mxu0 %vm243_vm0, %v3357_v2  ;;  %s234_s25 = scalar_select %p233_p6, %s3301_s22, 1  ;;  %v602_v44 = vld [vmem:[%s3589_s4] sm:$0xff]  ;;  %v1429_v50 = vld [vmem:[#allocation2 + $0x48] sm:$0xff]  ;;  %3124 = vset.pattern.permute.xlu1 %v3239_v51  ;;  %v3241_v53 = vmov 4   ;;  %v3242_v54 = vmov 6   ;;  %v3243_v55 = vmov 2  }
  0x28   : > { %v433_v31 = vadd.s32 8, %v432_v30  ;;  %vm436_vm2 = vcmp.eq.s32.totalorder %v432_v30, %v435_v32  ;;  %v1338_v48 = vld [vmem:[#allocation2 + $0x40] sm:$0xff]  ;;  %3123 = vset.pattern.permute.xlu0 %v3239_v51  ;;  %v3244_v56 = vmov 7   ;;  %v3245_v57 = vmov 3   ;;  %v1093_v61 = vld [vmem:[#allocation2 + $0x28] sm:$0xff]  ;;  %v1184_v63 = vld [vmem:[#allocation2 + $0x30] sm:$0xff] }
  0x29   : > { %s2817_s26 = sshll.u32 %s234_s25, 4  ;;  %v2756_v38 = vsel %vm436_vm2, 1.0, %v3238_v37  ;;  %v941_v49 = vld [vmem:[#allocation2 + $0x20] sm:$0xff]  ;;  %v3246_v58 = vmov 5   ;;  %v1676_v62 = vld [vmem:[#allocation2 + $0x68] sm:$0xff]  ;;  %v1828_v0 = vld [vmem:[#allocation2 + $0x70] sm:$0xff] }
  0x2a   : > { %s237_s7 = scalar_lea.vmem %s3587_s2, %s2817_s26  ;;  %vm437_vm3 = vcmp.eq.s32.totalorder %v433_v31, %v435_v32  ;;  %s230_s10 = sand.u32 1, %s3225_s19  }
  0x2b   : > { %v3372_v19 = vld [vmem:[%s237_s7 + $0x8] sm:$0xff]  ;;  %v3375_v20 = vld [vmem:[%s237_s7] sm:$0xff]  ;;  %v2757_v40 = vsel %vm437_vm3, 1.0, %v3238_v37  ;;  %s2749_s11 = sshll.u32 %s230_s10, 4  ;;  %s2818_s14 = sshll.u32 %s3301_s22, 8 }
  0x2c   : > { %2914 = vmatprep.subr.mxu1 %v3372_v19  ;;  %s232_s12 = scalar_lea.vmem [#allocation5], %s2749_s11  ;;  %s3541_s17 = scalar_lea.hbm %s3590_s5, %s2818_s14 }
  0x2d   : > { %2915 = vmatpush3.msra.mxu1 %v3372_v19  ;;  %s2669_s13 = sshll.u32 %s232_s12, 4  ;;  %s3545_s23 = scalar_lea.sflag [#allocation4], %s230_s10  ;;  %s3536_s13 = int_to_ptr.vmem [resolvable:$true] %s2669_s13 }
  0x2e   : > { %2916 = vmatprep.subr.mxu1 %v3375_v20  ;;  %s3169_s22 = scalar_lea.vmem %s3536_s13, 256  ;;  %s3247_s25 = smov [#allocation5]  }
  0x2f   : > { %2917 = vmatpush3.msra.mxu1 %v3375_v20  ;;  %p3170_p8 = scmp.ne.s32.totalorder %s3536_s13, %s3169_s22  ;;  %s3173_s26 = sshll.u32 %s3247_s25, 4  ;;  %s3174_s26 = int_to_ptr.vmem [resolvable:$false] %s3173_s26 }
  0x30   : > { %2928 = vmatprep.subr.mxu1 %v3372_v19  ;;  %s3175_s30 = scalar_lea.vmem %s3174_s26, 512  ;;  %p3176_p11 = scmp.lt.s32.totalorder %s3536_s13, %s3174_s26 }
  0x31   : > { %p3171_p9 = pnand %p3170_p8, %p3318_p5  ;;  %p3177_p12 = scmp.lt.s32.totalorder %s3175_s30, %s3169_s22 }
  0x33   : > { %p3172_p10 = pneg %p3171_p9  ;;  %p3178_p13 = por %p3177_p12, %p3176_p11 }
  0x35   : > { %p3179_p0 = pnand %p3178_p13, %p3172_p10 }
  0xe7   : > { %v2913_v3 = vpop.f32.mrf.mxu0 }
  0xe8   : > { %v326_v4 = vmax.f32 %v2913_v3, 0.0  ;;  %v1583_v3 = vld [vmem:[#allocation2 + $0x58] sm:$0xff] }
  0xe9   : > { %v316_v5 = vpop.f32.mrf.mxu0 }
  0xea   : > { %v325_v6 = vmax.f32 %v316_v5, 0.0  ;;  %v331_v7 = vsel %vm327_vm1, %v326_v4, -inf  ;;  %v1674_v5 = vld [vmem:[#allocation2 + $0x60] sm:$0xff] }
  0xeb   : > { %332 = vmax.xlane.f32.xlu0 %v331_v7  ;;  %v1921_v7 = vld [vmem:[#allocation2 + $0x80] sm:$0xff] }
  0xec   : > { %v328_v8 = vsel %vm327_vm1, %v325_v6, -inf }
  0xef   : > { %329 = vmax.xlane.f32.xlu0 %v328_v8  ;;  %v2409_v8 = vld [vmem:[#allocation2 + $0xa8] sm:$0xff] }
 0x105   : > { %854 = vperm.xlu0 %3123, %v3352_v1  }
 0x109   : > { %3129 = vset.pattern.permute.xlu0 %v3241_v53 }
 0x10a   : > { %1911 = vperm.xlu0 %3129, %v3357_v2  }
 0x10e   : > { %3131 = vset.pattern.permute.xlu0 %v3242_v54 }
 0x10f   : > { %2397 = vperm.xlu0 %3131, %v3352_v1  }
 0x113   : > { %3134 = vset.pattern.permute.xlu0 %v3244_v56 }
 0x114   : > { %2646 = vperm.xlu0 %3134, %v3357_v2  }
 0x174   : > { %v333_v9 = vpop.xlane.xlu0 %332 }
 0x175   : > { %v335_v10 = vsub.f32 %v326_v4, %v333_v9  ;;  %v2166_v4 = vld [vmem:[#allocation2 + $0x98] sm:$0xff]  ;;  %v2073_v9 = vld [vmem:[#allocation2 + $0x88] sm:$0xff] }
 0x177   : > { %v338_v11 = vmul.f32 1.442695, %v335_v10  ;;  %v2164_v10 = vld [vmem:[#allocation2 + $0x90] sm:$0xff] }
 0x178   : > { %v330_v12 = vpop.xlane.xlu0 %329 }
 0x179   : > { %3135 = vpow2.f32 %v338_v11  ;;  %v334_v13 = vsub.f32 %v325_v6, %v330_v12  ;;  %v2318_v6 = vld [vmem:[#allocation2 + $0xa0] sm:$0xff]  ;;  %v2411_v11 = vld [vmem:[#allocation2 + $0xb0] sm:$0xff]  ;;  %v2563_v12 = vld [vmem:[#allocation2 + $0xb8] sm:$0xff] }
 0x17b   : > { %v336_v14 = vmul.f32 1.442695, %v334_v13 }
 0x17d   : > { %3137 = vpow2.f32 %v336_v14 }
 0x186   : > { %v3136_v15 = vpop.eup %3135 }
 0x187   : > { %v343_v16 = vsel %vm327_vm1, %v3136_v15, 0.0 }
 0x188   : > { %344 = vadd.xlane.f32.xlu1 %v343_v16 }
 0x18a   : > { %v3138_v17 = vpop.eup %3137 }
 0x18b   : > { %v340_v18 = vsel %vm327_vm1, %v3138_v17, 0.0 }
 0x18c   : > { %341 = vadd.xlane.f32.xlu1 %v340_v18 }
 0x19d   : > { %858 = vperm.xlu1 %3124, %v3357_v2  }
 0x1a1   : > { %3125 = vset.pattern.permute.xlu1 %v3240_v52 }
 0x1a2   : > { %1172 = vperm.xlu1 %3125, %v3352_v1  }
 0x1a6   : > { %1176 = vperm.xlu1 %3125, %v3357_v2  }
 0x1aa   : > { %3126 = vset.pattern.permute.xlu1 %v3243_v55 }
 0x1ab   : > { %1417 = vperm.xlu1 %3126, %v3352_v1  }
 0x1af   : > { %1421 = vperm.xlu1 %3126, %v3357_v2  }
 0x1b3   : > { %3127 = vset.pattern.permute.xlu1 %v3245_v57 }
 0x1b4   : > { %1662 = vperm.xlu1 %3127, %v3352_v1  }
 0x1b8   : > { %1666 = vperm.xlu1 %3127, %v3357_v2  }
 0x1bc   : > { %3128 = vset.pattern.permute.xlu1 %v3241_v53 }
 0x1bd   : > { %1907 = vperm.xlu1 %3128, %v3352_v1  }
 0x1c1   : > { %3130 = vset.pattern.permute.xlu1 %v3246_v58 }
 0x1c2   : > { %2152 = vperm.xlu1 %3130, %v3352_v1  }
 0x1c6   : > { %2156 = vperm.xlu1 %3130, %v3357_v2  }
 0x1ca   : > { %3132 = vset.pattern.permute.xlu1 %v3242_v54 }
 0x1cb   : > { %2401 = vperm.xlu1 %3132, %v3357_v2  }
 0x1cf   : > { %3133 = vset.pattern.permute.xlu1 %v3244_v56 }
 0x1d0   : > { %2642 = vperm.xlu1 %3133, %v3352_v1  }
 0x211   : > { %v345_v21 = vpop.xlane.xlu1 %344 }
 0x212   : > { %3139 = vrcp.f32 %v345_v21 }
 0x215   : > { %v342_v22 = vpop.xlane.xlu1 %341 }
 0x216   : > { %3141 = vrcp.f32 %v342_v22 }
 0x21f   : > { %v3140_v23 = vpop.eup %3139 }
 0x220   : > { %v349_v24 = vmul.f32 %v3140_v23, %v3136_v15 }
 0x222   : > { %2921 = vmatprep.subr.mxu0 %v349_v24 }
 0x223   : > { %v3142_v25 = vpop.eup %3141  ;;  %2922 = vmatpush3.msra.mxu0 %v349_v24 }
 0x224   : > { %v347_v26 = vmul.f32 %v3142_v25, %v3138_v17  ;;  %v859_v17 = vpop.permute.xlu1 %858 }
 0x226   : > { %2918 = vmatprep.mubr.msk.f32.mxu1 %vm327_vm1, %v347_v26  ;;  %2923 = vmatprep.subr.mxu0 %v347_v26 }
 0x227   : > { %2925 = vmatprep.mubr.msk.f32.mxu0 %vm327_vm1, %v347_v26  ;;  %2919 = vmatmul.mubr.msk.f32.vlgmr.msra.gmra.mxu1 %vm327_vm1, %v349_v24 }
 0x228   : > { %2924 = vmatpush3.msra.mxu0 %v347_v26  ;;  %2929 = vmatpush3.msra.mxu1 %v3372_v19 }
 0x229   : > { %2926 = vmatmul.mubr.msk.f32.vlgmr.msra.gmra.mxu0 %vm327_vm1, %v349_v24  ;;  %2930 = vmatprep.subr.mxu1 %v3375_v20 }
 0x22a   : > { %2931 = vmatpush3.msra.mxu1 %v3375_v20  ;;  %2935 = vmatprep.subr.mxu0 %v605_v27 }
 0x22b   : > { %2936 = vmatpush3.msra.mxu0 %v605_v27  ;;  %2940 = vmatprep.subr.mxu1 %v603_v28 }
 0x22c   : > { %2945 = vmatprep.subr.mxu0 %v769_v47 }
 0x2e7   : > { %v3388_v33 = vpop.f32.mrf.mxu1 }
 0x2e9   : > { %v2927_v34 = vpop.f32.mrf.mxu0  ;;  %v3390_v35 = vpop.f32.mrf.mxu1 }
 0x2ea   : > { %2937 = vmatprep.mubr.msk.f32.mxu0 %vm243_vm0, %v3390_v35  ;;  %v518_v36 = vmul.f32 2.0, %v2927_v34 }
 0x2eb   : > { %v508_v39 = vpop.f32.mrf.mxu0  ;;  %2938 = vmatmul.mubr.msk.f32.vlgmr.msra.gmra.mxu0 %vm243_vm0, %v3388_v33 }
 0x2ec   : > { %v517_v41 = vmul.f32 2.0, %v508_v39  ;;  %v520_v43 = vsub.f32 %v518_v36, %v2757_v40  ;;  %2946 = vmatpush3.msra.mxu0 %v769_v47 }
 0x2ed   : > { %2955 = vmatprep.subr.mxu0 %v941_v49 }
 0x2ee   : > { %v519_v42 = vsub.f32 %v517_v41, %v2756_v38 }
 0x2f0   : > { %2932 = vmatprep.mubr.msk.f32.mxu1 %vm327_vm1, %v519_v42 }
 0x2f1   : > { %2933 = vmatmul.mubr.msk.f32.vlgmr.msra.gmra.mxu1 %vm327_vm1, %v520_v43 }
 0x2f2   : > { %2941 = vmatpush3.msra.mxu1 %v603_v28  ;;  %2942 = vmatprep.mubr.msk.f32.mxu1 %vm243_vm0, %v3375_v20 }
 0x2f3   : > { %2950 = vmatprep.subr.mxu1 %v602_v44 }
 0x2f5   : > { %2943 = vmatmul.mubr.msk.f32.vlgmr.msra.gmra.mxu1 %vm243_vm0, %v3372_v19 }
 0x2f6   : > { %2951 = vmatpush3.msra.mxu1 %v602_v44  ;;  %2952 = vmatprep.mubr.msk.f32.mxu1 %vm243_vm0, %v3352_v1  ;;  %v1431_v1 = vld [vmem:[#allocation2 + $0x50] sm:$0xff] }
 0x2f7   : > { %2960 = vmatprep.subr.mxu1 %v939_v45 }
 0x2f9   : > { %2953 = vmatmul.mubr.msk.f32.vlgmr.msra.gmra.mxu1 %vm243_vm0, %v3357_v2  ;;  %v1919_v2 = vld [vmem:[#allocation2 + $0x78] sm:$0xff] }
 0x2fa   : > { %2961 = vmatpush3.msra.mxu1 %v939_v45  ;;  %2962 = vmatprep.mubr.msk.f32.mxu1 %vm243_vm0, %v3375_v20 }
 0x2fb   : > { %2970 = vmatprep.subr.mxu1 %v1186_v46 }
 0x2fd   : > { %2963 = vmatmul.mubr.msk.f32.vlgmr.msra.gmra.mxu1 %vm243_vm0, %v3372_v19 }
 0x2fe   : > { %2972 = vmatprep.mubr.msk.f32.mxu1 %vm243_vm0, %v3390_v35  ;;  %2971 = vmatpush3.msra.mxu1 %v1186_v46 }
 0x2ff   : > { %2980 = vmatprep.subr.mxu1 %v1338_v48 }
 0x301   : > { %2973 = vmatmul.mubr.msk.f32.vlgmr.msra.gmra.mxu1 %vm243_vm0, %v3388_v33 }
 0x302   : > { %2981 = vmatpush3.msra.mxu1 %v1338_v48 }
 0x303   : > { %2990 = vmatprep.subr.mxu1 %v1429_v50 }
 0x3ab   : > { %v2939_v21 = vpop.f32.mrf.mxu0 }
 0x3ad   : > { %v678_v24 = vpop.f32.mrf.mxu0 }
 0x3b1   : > { %v3433_v59 = vpop.f32.mrf.mxu1 }
 0x3b3   : > { %v3435_v60 = vpop.f32.mrf.mxu1 }
 0x3b4   : > { %2947 = vmatprep.mubr.msk.f32.mxu0 %vm243_vm0, %v3435_v60  ;;  %2982 = vmatprep.mubr.msk.f32.mxu1 %vm243_vm0, %v3435_v60 }
 0x3b5   : > { %2948 = vmatmul.mubr.msk.f32.vlgmr.msra.gmra.mxu0 %vm243_vm0, %v3433_v59  ;;  %2983 = vmatmul.mubr.msk.f32.vlgmr.msra.gmra.mxu1 %vm243_vm0, %v3433_v59  ;;  %v2944_v13 = vpop.f32.mrf.mxu1 }
 0x3b6   : > { %2956 = vmatpush3.msra.mxu0 %v941_v49  ;;  %2957 = vmatprep.mubr.msk.f32.mxu0 %vm243_vm0, %v3390_v35  ;;  %v765_v53 = vadd.f32 %v2944_v13, %v2939_v21 }
 0x3b7   : > { %2991 = vmatpush3.msra.mxu1 %v1429_v50  ;;  %2992 = vmatprep.mubr.msk.f32.mxu1 %vm243_vm0, %v3375_v20  ;;  %v759_v14 = vpop.f32.mrf.mxu1 }
 0x3b8   : > { %2965 = vmatprep.subr.mxu0 %v1093_v61  ;;  %3000 = vmatprep.subr.mxu1 %v1676_v62  ;;  %v760_v56 = vadd.f32 %v759_v14, %v678_v24 }
 0x3b9   : > { %2958 = vmatmul.mubr.msk.f32.vlgmr.msra.gmra.mxu0 %vm243_vm0, %v3388_v33  ;;  %2993 = vmatmul.mubr.msk.f32.vlgmr.msra.gmra.mxu1 %vm243_vm0, %v3372_v19  ;;  %v3517_v15 = vpop.f32.mrf.mxu1 }
 0x3ba   : > { %2966 = vmatpush3.msra.mxu0 %v1093_v61  ;;  %2967 = vmatprep.mubr.msk.f32.mxu0 %vm243_vm0, %v3435_v60 }
 0x3bb   : > { %3002 = vmatprep.mubr.msk.f32.mxu1 %vm243_vm0, %v3390_v35  ;;  %3001 = vmatpush3.msra.mxu1 %v1676_v62  ;;  %v3519_v16 = vpop.f32.mrf.mxu1  ;;  %v855_v62 = vpop.permute.xlu0 %854 }
 0x3bc   : > { %2975 = vmatprep.subr.mxu0 %v1184_v63  ;;  %3010 = vmatprep.subr.mxu1 %v1828_v0 }
 0x3bd   : > { %2968 = vmatmul.mubr.msk.f32.vlgmr.msra.gmra.mxu0 %vm243_vm0, %v3433_v59  ;;  %3003 = vmatmul.mubr.msk.f32.vlgmr.msra.gmra.mxu1 %vm243_vm0, %v3388_v33  ;;  %v2964_v18 = vpop.f32.mrf.mxu1 }
 0x3be   : > { %2976 = vmatpush3.msra.mxu0 %v1184_v63  ;;  %3012 = vmatprep.mubr.msk.f32.mxu1 %vm243_vm0, %v3435_v60 }
 0x3bf   : > { %2977 = vmatprep.mubr.msk.f32.mxu0 %vm243_vm0, %v3375_v20  ;;  %3011 = vmatpush3.msra.mxu1 %v1828_v0 }
 0x3c0   : > { %2985 = vmatprep.subr.mxu0 %v1431_v1  ;;  %3020 = vmatprep.subr.mxu1 %v1919_v2 }
 0x3c1   : > { %2978 = vmatmul.mubr.msk.f32.vlgmr.msra.gmra.mxu0 %vm243_vm0, %v3372_v19  ;;  %3013 = vmatmul.mubr.msk.f32.vlgmr.msra.gmra.mxu1 %vm243_vm0, %v3433_v59 }
 0x3c2   : > { %2986 = vmatpush3.msra.mxu0 %v1431_v1  ;;  %2987 = vmatprep.mubr.msk.f32.mxu0 %vm243_vm0, %v3390_v35 }
 0x3c3   : > { %3021 = vmatpush3.msra.mxu1 %v1919_v2  ;;  %3022 = vmatprep.mubr.msk.f32.mxu1 %vm243_vm0, %v3375_v20 }
 0x3c4   : > { %2995 = vmatprep.subr.mxu0 %v1583_v3  ;;  %3030 = vmatprep.subr.mxu1 %v2166_v4 }
 0x3c5   : > { %2988 = vmatmul.mubr.msk.f32.vlgmr.msra.gmra.mxu0 %vm243_vm0, %v3388_v33  ;;  %3023 = vmatmul.mubr.msk.f32.vlgmr.msra.gmra.mxu1 %vm243_vm0, %v3372_v19 }
 0x3c6   : > { %2996 = vmatpush3.msra.mxu0 %v1583_v3  ;;  %2997 = vmatprep.mubr.msk.f32.mxu0 %vm243_vm0, %v3435_v60 }
 0x3c7   : > { %3032 = vmatprep.mubr.msk.f32.mxu1 %vm243_vm0, %v3390_v35  ;;  %3031 = vmatpush3.msra.mxu1 %v2166_v4 }
 0x3c8   : > { %3005 = vmatprep.subr.mxu0 %v1674_v5  ;;  %3040 = vmatprep.subr.mxu1 %v2318_v6 }
 0x3c9   : > { %2998 = vmatmul.mubr.msk.f32.vlgmr.msra.gmra.mxu0 %vm243_vm0, %v3433_v59  ;;  %3033 = vmatmul.mubr.msk.f32.vlgmr.msra.gmra.mxu1 %vm243_vm0, %v3388_v33 }
 0x3ca   : > { %3006 = vmatpush3.msra.mxu0 %v1674_v5  ;;  %3042 = vmatprep.mubr.msk.f32.mxu1 %vm243_vm0, %v3435_v60 }
 0x3cb   : > { %3007 = vmatprep.mubr.msk.f32.mxu0 %vm243_vm0, %v3375_v20  ;;  %3041 = vmatpush3.msra.mxu1 %v2318_v6 }
 0x3cc   : > { %3015 = vmatprep.subr.mxu0 %v1921_v7  ;;  %3050 = vmatprep.subr.mxu1 %v2409_v8 }
 0x3cd   : > { %3008 = vmatmul.mubr.msk.f32.vlgmr.msra.gmra.mxu0 %vm243_vm0, %v3372_v19  ;;  %3043 = vmatmul.mubr.msk.f32.vlgmr.msra.gmra.mxu1 %vm243_vm0, %v3433_v59 }
 0x3ce   : > { %3016 = vmatpush3.msra.mxu0 %v1921_v7  ;;  %3017 = vmatprep.mubr.msk.f32.mxu0 %vm243_vm0, %v3390_v35 }
 0x3cf   : > { %3025 = vmatprep.subr.mxu0 %v2073_v9  ;;  %3051 = vmatpush3.msra.mxu1 %v2409_v8 }
 0x3d0   : > { %3052 = vmatprep.mubr.msk.f32.mxu1 %vm243_vm0, %v3375_v20 }
 0x3d1   : > { %3018 = vmatmul.mubr.msk.f32.vlgmr.msra.gmra.mxu0 %vm243_vm0, %v3388_v33  ;;  %3053 = vmatmul.mubr.msk.f32.vlgmr.msra.gmra.mxu1 %vm243_vm0, %v3372_v19 }
 0x3d2   : > { %3026 = vmatpush3.msra.mxu0 %v2073_v9  ;;  %3027 = vmatprep.mubr.msk.f32.mxu0 %vm243_vm0, %v3435_v60 }
 0x3d3   : > { %3035 = vmatprep.subr.mxu0 %v2164_v10 }
 0x3d5   : > { %3028 = vmatmul.mubr.msk.f32.vlgmr.msra.gmra.mxu0 %vm243_vm0, %v3433_v59 }
 0x3d6   : > { %3036 = vmatpush3.msra.mxu0 %v2164_v10  ;;  %3037 = vmatprep.mubr.msk.f32.mxu0 %vm243_vm0, %v3375_v20  ;;  %v1083_v20 = vpop.f32.mrf.mxu1 }
 0x3d7   : > { %3045 = vmatprep.subr.mxu0 %v2411_v11 }
 0x3d8   : > { %v2974_v22 = vpop.f32.mrf.mxu1 }
 0x3d9   : > { %3038 = vmatmul.mubr.msk.f32.vlgmr.msra.gmra.mxu0 %vm243_vm0, %v3372_v19  ;;  %v3521_v19 = vpop.permute.xlu1 %1172 }
 0x3da   : > { %3046 = vmatpush3.msra.mxu0 %v2411_v11  ;;  %3047 = vmatprep.mubr.msk.f32.mxu0 %vm243_vm0, %v3390_v35  ;;  %v1253_v25 = vpop.f32.mrf.mxu1 }
 0x3db   : > { %3055 = vmatprep.subr.mxu0 %v2563_v12 }
 0x3dd   : > { %3048 = vmatmul.mubr.msk.f32.vlgmr.msra.gmra.mxu0 %vm243_vm0, %v3388_v33  ;;  %v1177_v23 = vpop.permute.xlu1 %1176 }
 0x3de   : > { %3056 = vmatpush3.msra.mxu0 %v2563_v12  ;;  %3057 = vmatprep.mubr.msk.f32.mxu0 %vm243_vm0, %v3435_v60 }
 0x3e1   : > { %3058 = vmatmul.mubr.msk.f32.vlgmr.msra.gmra.mxu0 %vm243_vm0, %v3433_v59  ;;  %v3523_v28 = vpop.permute.xlu1 %1417 }
 0x3e5   : > { %v1422_v35 = vpop.permute.xlu1 %1421 }
 0x3e9   : > { %v3525_v42 = vpop.permute.xlu1 %1662 }
 0x3ed   : > { %v1667_v48 = vpop.permute.xlu1 %1666 }
 0x3f1   : > { %v1908_v52 = vpop.permute.xlu1 %1907 }
 0x3f5   : > { %v2153_v4 = vpop.permute.xlu1 %2152 }
 0x475   : > { %v2949_v26 = vpop.f32.mrf.mxu0  ;;  %v2984_v27 = vpop.f32.mrf.mxu1 }
 0x476   : > { %v852_v57 = vadd.f32 %v2949_v26, %v765_v53 }
 0x477   : > { %v842_v29 = vpop.f32.mrf.mxu0  ;;  %v1405_v30 = vpop.f32.mrf.mxu1 }
 0x478   : > { %v851_v61 = vadd.f32 %v842_v29, %v760_v56  ;;  %v862_v5 = vmul.f32 %v859_v17, %v852_v57 }
 0x479   : > { %v2959_v31 = vpop.f32.mrf.mxu0  ;;  %v2994_v32 = vpop.f32.mrf.mxu1 }
 0x47a   : > { %v1089_v58 = vadd.f32 %v2964_v18, %v2959_v31  ;;  %v861_v9 = vmul.f32 %v855_v62, %v851_v61 }
 0x47b   : > { %v1008_v33 = vpop.f32.mrf.mxu0  ;;  %v1573_v34 = vpop.f32.mrf.mxu1 }
 0x47c   : > { %v1084_v63 = vadd.f32 %v1083_v20, %v1008_v33  ;;  %v1912_v20 = vpop.permute.xlu0 %1911 }
 0x47d   : > { %v2969_v36 = vpop.f32.mrf.mxu0  ;;  %v3004_v37 = vpop.f32.mrf.mxu1 }
 0x47e   : > { %v1170_v0 = vadd.f32 %v2969_v36, %v1089_v58  ;;  %v2157_v36 = vpop.permute.xlu1 %2156 }
 0x47f   : > { %v1160_v38 = vpop.f32.mrf.mxu0  ;;  %v1743_v39 = vpop.f32.mrf.mxu1 }
 0x480   : > { %v1169_v6 = vadd.f32 %v1160_v38, %v1084_v63  ;;  %v1180_v12 = vmul.f32 %v1177_v23, %v1170_v0 }
 0x481   : > { %v2979_v40 = vpop.f32.mrf.mxu0  ;;  %v3014_v41 = vpop.f32.mrf.mxu1 }
 0x482   : > { %v1334_v59 = vadd.f32 %v2979_v40, %v2974_v22  ;;  %v1179_v26 = vmul.f32 %v3521_v19, %v1169_v6  ;;  %v2398_v19 = vpop.permute.xlu0 %2397 }
 0x483   : > { %v1328_v43 = vpop.f32.mrf.mxu0  ;;  %v1895_v44 = vpop.f32.mrf.mxu1 }
 0x484   : > { %v1329_v1 = vadd.f32 %v1328_v43, %v1253_v25  ;;  %v1415_v7 = vadd.f32 %v2984_v27, %v1334_v59  ;;  %v935_v25 = vadd.f32 %v3517_v15, %v862_v5 }
 0x485   : > { %v2989_v45 = vpop.f32.mrf.mxu0  ;;  %v3024_v46 = vpop.f32.mrf.mxu1 }
 0x486   : > { %v1579_v10 = vadd.f32 %v2994_v32, %v2989_v45  ;;  %v1414_v13 = vadd.f32 %v1405_v30, %v1329_v1  ;;  %v1425_v29 = vmul.f32 %v1422_v35, %v1415_v7  ;;  %v930_v32 = vadd.f32 %v3519_v16, %v861_v9  ;;  %v2647_v1 = vpop.permute.xlu0 %2646 }
 0x487   : > { %v1498_v47 = vpop.f32.mrf.mxu0  ;;  %v2063_v49 = vpop.f32.mrf.mxu1  ;;  %v1182_v23 = vadd.f32 %v1180_v12, %v935_v25 }
 0x488   : > { %v1574_v14 = vadd.f32 %v1573_v34, %v1498_v47  ;;  %v1424_v30 = vmul.f32 %v3523_v28, %v1414_v13  ;;  %v1181_v35 = vadd.f32 %v1179_v26, %v930_v32 }
 0x489   : > { %v2999_v50 = vpop.f32.mrf.mxu0  ;;  %v3034_v54 = vpop.f32.mrf.mxu1  ;;  %v1427_v45 = vadd.f32 %v1425_v29, %v1182_v23 }
 0x48a   : > { %v1660_v24 = vadd.f32 %v2999_v50, %v1579_v10  ;;  %v1426_v53 = vadd.f32 %v1424_v30, %v1181_v35 }
 0x48b   : > { %v1650_v51 = vpop.f32.mrf.mxu0  ;;  %v2233_v2 = vpop.f32.mrf.mxu1 }
 0x48c   : > { %v1659_v17 = vadd.f32 %v1650_v51, %v1574_v14 }
 0x48d   : > { %v3009_v55 = vpop.f32.mrf.mxu0  ;;  %v3044_v18 = vpop.f32.mrf.mxu1 }
 0x48e   : > { %v1824_v11 = vadd.f32 %v3009_v55, %v3004_v37 }
 0x48f   : > { %v1818_v60 = vpop.f32.mrf.mxu0  ;;  %v2385_v34 = vpop.f32.mrf.mxu1 }
 0x490   : > { %v1819_v21 = vadd.f32 %v1818_v60, %v1743_v39  ;;  %v1905_v33 = vadd.f32 %v3014_v41, %v1824_v11  ;;  %v1670_v39 = vmul.f32 %v1667_v48, %v1660_v24  ;;  %v1669_v41 = vmul.f32 %v3525_v42, %v1659_v17  ;;  %v2402_v48 = vpop.permute.xlu1 %2401 }
 0x491   : > { %v3019_v3 = vpop.f32.mrf.mxu0  ;;  %v3054_v47 = vpop.f32.mrf.mxu1 }
 0x492   : > { %v2069_v27 = vadd.f32 %v3024_v46, %v3019_v3  ;;  %v1904_v37 = vadd.f32 %v1895_v44, %v1819_v21  ;;  %v1915_v16 = vmul.f32 %v1912_v20, %v1905_v33  ;;  %v1671_v57 = vadd.f32 %v1669_v41, %v1426_v53 }
 0x493   : > { %v1988_v8 = vpop.f32.mrf.mxu0  ;;  %v2553_v59 = vpop.f32.mrf.mxu1 }
 0x494   : > { %v2064_v40 = vadd.f32 %v2063_v49, %v1988_v8  ;;  %v1914_v44 = vmul.f32 %v1908_v52, %v1904_v37  ;;  %v1672_v49 = vadd.f32 %v1670_v39, %v1427_v45  ;;  %v2643_v7 = vpop.permute.xlu1 %2642 }
 0x495   : > { %v3029_v22 = vpop.f32.mrf.mxu0 }
 0x496   : > { %v2150_v15 = vadd.f32 %v3029_v22, %v2069_v27  ;;  %v1917_v42 = vadd.f32 %v1915_v16, %v1672_v49  ;;  %v1916_v63 = vadd.f32 %v1914_v44, %v1671_v57 }
 0x497   : > { %v2140_v31 = vpop.f32.mrf.mxu0 }
 0x498   : > { %v2149_v50 = vadd.f32 %v2140_v31, %v2064_v40  ;;  %v2160_v56 = vmul.f32 %v2157_v36, %v2150_v15 }
 0x499   : > { %v3039_v38 = vpop.f32.mrf.mxu0 }
 0x49a   : > { %v2314_v43 = vadd.f32 %v3039_v38, %v3034_v54  ;;  %v2159_v60 = vmul.f32 %v2153_v4, %v2149_v50 }
 0x49b   : > { %v2308_v46 = vpop.f32.mrf.mxu0 }
 0x49c   : > { %v2309_v51 = vadd.f32 %v2308_v46, %v2233_v2  ;;  %v2395_v28 = vadd.f32 %v3044_v18, %v2314_v43  ;;  %v2162_v2 = vadd.f32 %v2160_v56, %v1917_v42  ;;  %v2161_v9 = vadd.f32 %v2159_v60, %v1916_v63 }
 0x49d   : > { %v3049_v55 = vpop.f32.mrf.mxu0 }
 0x49e   : > { %v2394_v54 = vadd.f32 %v2385_v34, %v2309_v51  ;;  %v2559_v61 = vadd.f32 %v3054_v47, %v3049_v55  ;;  %v2405_v62 = vmul.f32 %v2402_v48, %v2395_v28 }
 0x49f   : > { %v2478_v58 = vpop.f32.mrf.mxu0 }
 0x4a0   : > { %v2554_v52 = vadd.f32 %v2553_v59, %v2478_v58  ;;  %v2404_v3 = vmul.f32 %v2398_v19, %v2394_v54  ;;  %v2407_v8 = vadd.f32 %v2405_v62, %v2162_v2 }
 0x4a1   : > { %v3059_v0 = vpop.f32.mrf.mxu0 }
 0x4a2   : > { %v2640_v5 = vadd.f32 %v3059_v0, %v2559_v61  ;;  %v2406_v11 = vadd.f32 %v2404_v3, %v2161_v9 }
 0x4a3   : > { %v2630_v6 = vpop.f32.mrf.mxu0 }
 0x4a4   : > { %v2639_v10 = vadd.f32 %v2630_v6, %v2554_v52  ;;  %v2650_v4 = vmul.f32 %v2647_v1, %v2640_v5 }
 0x4a6   : > { %v2652_v12 = vadd.f32 %v2650_v4, %v2407_v8  ;;  %v2649_v13 = vmul.f32 %v2643_v7, %v2639_v10 }
 0x4a8   : > { %2654 = vst [vmem:[%s232_s12 + $0x8] sm:$0xff] %v2652_v12  ;;  %v2651_v14 = vadd.f32 %v2649_v13, %v2406_v11 }
 0x4aa   : > { %2653 = vst [vmem:[%s232_s12] sm:$0xff] %v2651_v14 }
 0x4ab   : > { %3182 = shalt.err (!%p3179_p0)
}
 0x4ac   : > { %s3183_s6 = scalar_lea.hbm %s3541_s17, 256  ;;  %s3187_s9 = scalar_lea.hbm %s3590_s5, 512 }
 0x4ad   : > { %p3184_p1 = scmp.ne.s32.totalorder %s3541_s17, %s3183_s6  ;;  %p3188_p4 = scmp.lt.s32.totalorder %s3541_s17, %s3590_s5 }
 0x4ae   : > { %p3189_p7 = scmp.lt.s32.totalorder %s3187_s9, %s3183_s6 }
 0x4af   : > { %p3185_p2 = pnand %p3184_p1, %p3318_p5 }
 0x4b0   : > { %p3190_p6 = por %p3189_p7, %p3188_p4 }
 0x4b1   : > { %p3186_p3 = pneg %p3185_p2 }
 0x4b3   : > { %p3191_p8 = pnand %p3190_p6, %p3186_p3 }
 0x4b5   : > { %3194 = shalt.err (!%p3191_p8)
}
 0x4b6   : > { %s3248_s12 = smov 128   ;;  %s3249_s14 = smov 8  }
 0x4b7   : > { %3064 = dma.vmem_to_hbm [thread:$0]  (%p3318_p5), %s3536_s13, 256, %s3541_s17, %s3545_s23, %s3248_s12, %s3248_s12, %s3249_s14  }
 0x4b8 PF: > { %p3076_p9 = scmp.ge.s32.totalorder %s3233_s21, 2  ;;  %s2684_s15 = sand.u32 1, %s3221_s18  }
 0x4b9   : > { %p3594_p10 = scmp.ne.s32.totalorder %s3592_s29, 0  ;;  %s2685_s16 = scalar_lea.sflag [#allocation4], %s2684_s15 }
 0x4bb   : > { %p3071_p11 = pnand %p3076_p9, %p3594_p10 }
 0x4bd   : > { %p3072_p12 = pneg %p3071_p11 }
 0x4bf   : > { %3216 = dma.done.wait (%p3072_p12), %s2685_s16, 256  }
 0x4c0   : > { %3218 = vsyncadd (%p3072_p12), %s2685_s16, 4294967040  ;;  %p16_p13 = scmp.ge.s32.totalorder %s3305_s24, 4   ;;  %s3595_s18 = smov %s3225_s19 }
 0x4c1   : > { %s3596_s19 = smov %s3229_s20  ;;  %s3597_s20 = smov %s3316_s27 }
 0x4c2   : > { %s3598_s21 = smov %s3305_s24  ;;  %18 = sbr.rel (!%p16_p13) target bundleno = 4 (0x4), region = 103 }
 0x4c7   :  { %2690 = vsyncpa [#allocation3], 1 }
 0x4c8   :  { %2692 = vsyncpa [#allocation3 + $0x1], 1 }
 0x4c9   :  { %2693 = vsyncpa [#allocation4], 1 }
 0x4ca   :  { %2695 = vsyncpa [#allocation4 + $0x1], 1 }

</bundles_post_ra>
